<compile_context>
chip_gen: v5e
topology: v5e:2x2
jax: 0.10.0
libtpu: 0.0.40
codegen_flags: <defaults>
</compile_context>

<pallas_src>
import functools
import math

import jax
import jax.numpy as jnp
from jax.experimental import pallas as pl
from jax.experimental.pallas import tpu as pltpu

_MIB = 1024 * 1024


def make_pe_table(d_model: int, max_len: int = 500, dtype=jnp.float32) -> jnp.ndarray:
    """Deterministic positional-encoding buffer, identical to the PyTorch init.

    Build it once in the activation dtype (hoists the per-call cast out of the
    forward hot path).
    """
    assert d_model % 2 == 0, "d_model must be even (same constraint as the PyTorch code)"
    position = jnp.arange(max_len, dtype=jnp.float32)[:, None]            # (L, 1)
    div_term = jnp.exp(jnp.arange(0, d_model, 2, dtype=jnp.float32)
                       * (-(math.log(10000.0) / d_model)))                # (D/2,)
    pe = jnp.zeros((max_len, 1, d_model), dtype=jnp.float32)
    pe = pe.at[:, 0, 0::2].set(jnp.sin(position * div_term))
    pe = pe.at[:, 0, 1::2].set(jnp.cos(position * div_term))
    return pe.astype(dtype)


# ----------------------------------------------------------------------------- kernels
def _pe_add_lane_bcast_kernel(x_ref, pe_ref, o_ref, *, reps: int):
    # x: (ts, B*D), pe: (ts, D). Replicate pe across the batch inside the
    # kernel (lane-axis concat: cheap VPU/XLU work hidden under the HBM DMA).
    pe = pe_ref[...]
    if reps > 1:
        pe = jnp.concatenate([pe] * reps, axis=-1)
    o_ref[...] = x_ref[...] + pe


def _pe_add_sublane_bcast_kernel(x_ref, pe_ref, o_ref):
    # x: (ts, B, D), pe: (ts, 1, D) -- sublane broadcast over batch.
    o_ref[...] = x_ref[...] + pe_ref[...]


# ----------------------------------------------------------------------------- tiling policy
def _round_up(n: int, m: int) -> int:
    return ((n + m - 1) // m) * m


def _device_tiling_params():
    """(vmem_budget_bytes for the 6 double-buffered blocks, target x-block bytes)."""
    kind = ""
    try:
        kind = jax.devices()[0].device_kind.lower()
    except Exception:
        pass
    if "v5" in kind:
        # v5e: 16 MiB default scoped VMEM; ~2 MiB blocks already hit >=90% of
        # the ~0.82 TB/s HBM roofline.
        return 12 * _MIB, 2 * _MIB
    if "v7" in kind:
        # v7x: 64 MiB physical VMEM, 3.2 TB/s HBM -> bigger blocks amortize the
        # ~0.35 us per-grid-step overhead.
        return 40 * _MIB, 6 * _MIB
    # v6e (and default): 32 MiB default scoped VMEM.
    return 24 * _MIB, 4 * _MIB


# ----------------------------------------------------------------------------- forward
def positional_encoding_forward(x: jnp.ndarray, pe: jnp.ndarray) -> jnp.ndarray:
    """x: (S, B, D); pe: (max_len, 1, D) or (max_len, D). Returns x + pe[:S]."""
    S, B, D = x.shape
    pe2d = pe.reshape(pe.shape[0], pe.shape[-1]) if pe.ndim == 3 else pe
    max_len = pe2d.shape[0]
    assert pe2d.shape[1] == D and max_len >= S
    if pe2d.dtype != x.dtype:
        # Prefer building the table in x.dtype (make_pe_table(..., dtype=...)).
        pe2d = pe2d.astype(x.dtype)

    itemsize = x.dtype.itemsize
    mult = max(8, 32 // itemsize)               # sublane rows: 8 f32 / 16 bf16 / 32 int8
    vmem_budget, target_block_bytes = _device_tiling_params()
    row_bytes = B * D * itemsize

    if S <= mult:
        ts = S                                  # single (full-extent) block
    else:
        ts = max(mult, (target_block_bytes // row_bytes) // mult * mult)
        # Guarantee >=2 grid steps when possible (lets the parallel seq grid
        # shard across both TensorCores on v7x).
        ts = min(ts, _round_up(-(-S // 2), mult))
        ts = min(ts, _round_up(S, mult))

    def _footprint(t):
        # 2x double-buffered: x block, out block, pe block (pe is (t, D)).
        return 2 * (2 * t * B * D + t * D) * itemsize

    while _footprint(ts) > vmem_budget and ts > mult:
        ts = max(mult, (ts // 2) // mult * mult)

    grid = (pl.cdiv(S, ts),)
    vmem_limit = int(min(max(_footprint(ts) + 8 * _MIB, 32 * _MIB), 48 * _MIB))
    compiler_params = pltpu.CompilerParams(
        dimension_semantics=("parallel",),
        vmem_limit_bytes=vmem_limit,
    )

    if B % 8 == 0 and D % 128 == 0:
        # Sublane/lane-dense 3-D path: pe streamed at 1/B of x bandwidth and
        # broadcast across the batch sublanes in-register.
        pe3 = pe2d[:, None, :]                  # metadata-only reshape
        return pl.pallas_call(
            _pe_add_sublane_bcast_kernel,
            out_shape=jax.ShapeDtypeStruct((S, B, D), x.dtype),
            grid_spec=pltpu.PrefetchScalarGridSpec(
                num_scalar_prefetch=0,
                grid=grid,
                in_specs=[
                    pl.BlockSpec((ts, B, D), lambda i: (i, 0, 0)),
                    pl.BlockSpec((ts, 1, D), lambda i: (i, 0, 0)),
                ],
                out_specs=pl.BlockSpec((ts, B, D), lambda i: (i, 0, 0)),
            ),
            compiler_params=compiler_params,
        )(x, pe3)

    # Small-batch / small-D path: flatten (B, D) into one dense lane axis so
    # sublane (ts) and lane (B*D) tiles stay as dense as the problem allows.
    # pe enters the kernel as (ts, D) and is replicated across batch in-kernel.
    x2 = x.reshape(S, B * D)
    out2 = pl.pallas_call(
        functools.partial(_pe_add_lane_bcast_kernel, reps=B),
        out_shape=jax.ShapeDtypeStruct((S, B * D), x.dtype),
        grid_spec=pltpu.PrefetchScalarGridSpec(
            num_scalar_prefetch=0,
            grid=grid,
            in_specs=[
                pl.BlockSpec((ts, B * D), lambda i: (i, 0)),
                pl.BlockSpec((ts, D), lambda i: (i, 0)),
            ],
            out_specs=pl.BlockSpec((ts, B * D), lambda i: (i, 0)),
        ),
        compiler_params=compiler_params,
    )(x2, pe2d)
    return out2.reshape(S, B, D)


if __name__ == "__main__":
    key = jax.random.PRNGKey(0)
    k1, k2, k3, k4 = jax.random.split(key, 4)

    # Case 1: module-sized shapes (seq=8, batch=2, d_model=32) -> lane-flattened path.
    S, B, D = 8, 2, 32
    pe = make_pe_table(D, max_len=500)
    x = jax.random.normal(k1, (S, B, D), dtype=jnp.float32)
    out = jax.block_until_ready(positional_encoding_forward(x, pe))
    assert out.shape == (S, B, D)
    assert jnp.allclose(out, x + pe[:S], atol=1e-6), "mismatch (case 1)"

    # Case 2: multi-block grid with a partial trailing block; full pe table, no slice op.
    S, B, D = 24, 2, 64
    pe = make_pe_table(D, max_len=500)
    x = jax.random.normal(k2, (S, B, D), dtype=jnp.float32)
    out = jax.block_until_ready(positional_encoding_forward(x, pe))
    assert jnp.allclose(out, x + pe[:S], atol=1e-6), "mismatch (case 2)"

    # Case 3: sublane/lane-dense 3-D path (B % 8 == 0, D % 128 == 0), 2 grid steps.
    S, B, D = 16, 8, 128
    pe = make_pe_table(D, max_len=500)
    x = jax.random.normal(k3, (S, B, D), dtype=jnp.float32)
    out = jax.block_until_ready(positional_encoding_forward(x, pe))
    assert jnp.allclose(out, x + pe[:S], atol=1e-6), "mismatch (case 3)"

    # Case 4: bf16 (dtype-aware sublane rounding); pe table pre-cast at build time.
    S, B, D = 32, 2, 32
    pe = make_pe_table(D, max_len=500, dtype=jnp.bfloat16)
    x = jax.random.normal(k4, (S, B, D), dtype=jnp.bfloat16)
    out = jax.block_until_ready(positional_encoding_forward(x, pe))
    ref = x + pe[:S]
    assert jnp.allclose(out.astype(jnp.float32), ref.astype(jnp.float32),
                        atol=1e-2), "mismatch (case 4)"

    print("KERNEL_OK")
</pallas_src>

<mosaic_0001>
module attributes {stable_mosaic.version = 11 : i64} {
  func.func @_pe_add_lane_bcast_kernel(%arg0: i32, %arg1: memref<8x64xf32, #tpu.memory_space<vmem>>, %arg2: memref<8x32xf32, #tpu.memory_space<vmem>>, %arg3: memref<8x64xf32, #tpu.memory_space<vmem>>) attributes {dimension_semantics = [#tpu.dimension_semantics<parallel>], iteration_bounds = array<i64: 1>, scalar_prefetch = 0 : i64, scratch_operands = 0 : i64, tpu.core_type = #tpu.core_type<tc>, window_params = [{transform_indices = @transform_0, window_bounds = array<i64: 8, 64>}, {transform_indices = @transform_1, window_bounds = array<i64: 8, 32>}, {transform_indices = @transform_2, window_bounds = array<i64: 8, 64>}]} {
    %c0 = arith.constant 0 : index
    %c0_0 = arith.constant 0 : index
    %0 = vector.load %arg2[%c0, %c0_0] : memref<8x32xf32, #tpu.memory_space<vmem>>, vector<8x32xf32>
    %1 = tpu.concatenate %0, %0 in 1 : vector<8x32xf32>, vector<8x32xf32> -> vector<8x64xf32>
    %c0_1 = arith.constant 0 : index
    %c0_2 = arith.constant 0 : index
    %2 = vector.load %arg1[%c0_1, %c0_2] : memref<8x64xf32, #tpu.memory_space<vmem>>, vector<8x64xf32>
    %3 = arith.addf %2, %1 : vector<8x64xf32>
    %c0_3 = arith.constant 0 : index
    %c0_4 = arith.constant 0 : index
    %4 = vector.load %arg3[%c0_3, %c0_4] : memref<8x64xf32, #tpu.memory_space<vmem>>, vector<8x64xf32>
    tpu.vector_store %arg3[%c0_3, %c0_4], %3 {strides = array<i32>} : memref<8x64xf32, #tpu.memory_space<vmem>>, vector<8x64xf32>,
    return
  }
  func.func @transform_0(%arg0: i32) -> (i32, i32) {
    %c0_i32 = arith.constant 0 : i32
    %c0_i32_0 = arith.constant 0 : i32
    return %arg0, %c0_i32 : i32, i32
  }
  func.func @transform_1(%arg0: i32) -> (i32, i32) {
    %c0_i32 = arith.constant 0 : i32
    %c0_i32_0 = arith.constant 0 : i32
    return %arg0, %c0_i32 : i32, i32
  }
  func.func @transform_2(%arg0: i32) -> (i32, i32) {
    %c0_i32 = arith.constant 0 : i32
    %c0_i32_0 = arith.constant 0 : i32
    return %arg0, %c0_i32 : i32, i32
  }
}

</mosaic_0001>

<bundles_post_ra>
// kernel: tpu_custom_call.1
= control target key start
LH: loop header
LB: loop body
LE: loop exit
PB: predicated region body
PF: predicated region fallthrough
CT: control target
= control target key end

     0   :  { %s93_s0 = inlined_call_operand.vmem [shape: f32[8,64], index: 0, kind: input, shape index: {}]   ;;  %s94_s1 = inlined_call_operand.vmem [shape: f32[500,32], index: 1, kind: input, shape index: {}]   ;;  %s95_s2 = inlined_call_operand.hbm [shape: f32[8,64], index: 2, kind: output, shape index: {}]  }
   0x1   :  { %v12_v0 = vld [vmem:[%s94_s1] sm:$0xff] }
   0x2   :  { %7 = vsyncpa [#allocation3], 0  ;;  %s67_s11 = smov 32   ;;  %vm17_vm0 = vcmask 261120   ;;  %v19_v1 = vld [vmem:[%s93_s0] sm:$0xff]  ;;  %s68_s14 = smov [#allocation2]  }
   0x3   :  { %14 = vrot.lane.b32.xlu0 %v12_v0, %s67_s11  ;;  %s28_s15 = sshll.u32 %s68_s14, 4  ;;  %s30_s18 = sshll.u32 %s95_s2, 4  ;;  %vm21_vm1 = vcmask 523264   ;;  %s29_s15 = int_to_ptr.vmem [resolvable:$true] %s28_s15  ;;  %s31_s18 = int_to_ptr.hbm [resolvable:$true] %s30_s18 }
  0x75   :  { %v15_v2 = vpop.permute.xlu0 %14 }
  0x76   :  { %v18_v3 = vsel %vm17_vm0, %v12_v0, %v15_v2 }
  0x77   :  { %v20_v4 = vadd.f32 %v19_v1, %v18_v3 }
  0x79   :  { %22 = vst.msk [vmem:[#allocation2] sm:$0xff] %vm21_vm1, %v20_v4 }
  0x7a   :  { %33 = dma.vmem_to_hbm [thread:$0]  %s29_s15, 128, %s31_s18, [#allocation3]  }
  0x7b   :  { %65 = dma.done.wait [#allocation3], 128  }
  0x7c   :  { %66 = vsyncadd [#allocation3], 4294967168 }
  0x7d   :  { %38 = vsyncpa [#allocation3], 1 }

</bundles_post_ra>
